<compile_context>
chip_gen: v7x
topology: tpu7x:2x2x1
jax: 0.10.0
libtpu: 0.0.40
codegen_flags: <defaults>
</compile_context>

<pallas_src>
import jax
import jax.numpy as jnp
from jax.experimental import pallas as pl
from jax.experimental.pallas import tpu as pltpu


def _linear_kernel(x_ref, w_ref, b_ref, o_ref, acc_ref):
    # x_ref:  (TB, TK) VMEM tile of the input batch block
    # w_ref:  (1, TK)  VMEM tile of the weight (lane-dense)
    # b_ref:  (1, 1)   SMEM scalar bias
    # o_ref:  (TB, 1)  output tile (same block revisited across k -> accumulator out)
    # acc_ref:(TB, 1)  f32 VMEM scratch accumulator
    k = pl.program_id(1)

    @pl.when(k == 0)
    def _():
        acc_ref[...] = jnp.zeros_like(acc_ref)

    x = x_ref[...].astype(jnp.float32)
    w = w_ref[...].astype(jnp.float32)
    # VPU broadcast-multiply + XLU row reduce (no MXU for an N=1 "matmul").
    acc_ref[...] += jnp.sum(x * w, axis=-1, keepdims=True)

    @pl.when(k == pl.num_programs(1) - 1)
    def _():
        o_ref[...] = (acc_ref[...] + b_ref[0, 0]).astype(o_ref.dtype)


def _round_up(v, m):
    return ((v + m - 1) // m) * m


def _choose_tiles(B, D, itemsize, target_x_bytes=2 << 20, max_tb=4096):
    """Pick (TB, TK) so each x tile is ~2 MiB and all buffers fit default VMEM."""
    row_bytes = max(1, D * itemsize)
    if 8 * row_bytes > target_x_bytes:
        # Very wide feature dim: tile the reduction axis too.
        tb = 8
        tk = max(128, ((target_x_bytes // (tb * itemsize)) // 128) * 128)
        tk = min(tk, _round_up(D, 128))
    else:
        tk = D                                   # whole reduction axis per block
        tb = max(8, ((target_x_bytes // row_bytes) // 8) * 8)
        tb = min(tb, max_tb, _round_up(B, 8))    # don't over-pad small batches
    return tb, tk


@jax.jit
def linear_regression_forward(x, weight, bias):
    """y = x @ weight.T + bias.  x: (B, D), weight: (1, D), bias: (1,) -> (B, 1)."""
    B, D = x.shape
    itemsize = jnp.dtype(x.dtype).itemsize
    TB, TK = _choose_tiles(B, D, itemsize)

    nb = pl.cdiv(B, TB)
    nk = pl.cdiv(D, TK)
    Bp, Dp = nb * TB, nk * TK

    x_p = x
    if Bp != B or Dp != D:
        x_p = jnp.pad(x, ((0, Bp - B), (0, Dp - D)))
    w_p = weight if Dp == D else jnp.pad(weight, ((0, 0), (0, Dp - D)))
    b2 = bias.reshape(1, 1).astype(jnp.float32)  # (1, 1) scalar for SMEM

    out = pl.pallas_call(
        _linear_kernel,
        out_shape=jax.ShapeDtypeStruct((Bp, 1), x.dtype),
        grid=(nb, nk),
        in_specs=[
            pl.BlockSpec((TB, TK), lambda i, k: (i, k)),           # stream x tiles
            pl.BlockSpec((1, TK), lambda i, k: (0, k)),            # weight, lane-dense
            pl.BlockSpec(memory_space=pltpu.MemorySpace.SMEM),     # bias scalar
        ],
        out_specs=pl.BlockSpec((TB, 1), lambda i, k: (i, 0)),
        scratch_shapes=[pltpu.VMEM((TB, 1), jnp.float32)],
        compiler_params=pltpu.CompilerParams(
            dimension_semantics=("parallel", "arbitrary"),
        ),
    )(x_p, w_p, b2)

    return out[:B] if Bp != B else out


if __name__ == "__main__":
    key = jax.random.PRNGKey(0)
    k_x, k_w, k_b = jax.random.split(key, 3)

    batch = 8
    input_size = 32

    # Deterministic parameter init (mimics nn.Linear's U(-1/sqrt(D), 1/sqrt(D)))
    bound = 1.0 / (input_size ** 0.5)
    weight = jax.random.uniform(k_w, (1, input_size), jnp.float32, -bound, bound)
    bias = jax.random.uniform(k_b, (1,), jnp.float32, -bound, bound)

    x = jax.random.normal(k_x, (batch, input_size), jnp.float32)

    out = jax.block_until_ready(linear_regression_forward(x, weight, bias))

    # Reference check against plain JAX
    ref = x @ weight.T + bias
    assert out.shape == (batch, 1)
    assert jnp.allclose(out, ref, atol=1e-5, rtol=1e-5)

    print("KERNEL_OK")
</pallas_src>

<mosaic_0001>
module attributes {stable_mosaic.version = 11 : i64} {
  func.func @_linear_kernel(%arg0: i32, %arg1: i32, %arg2: memref<8x32xf32, #tpu.memory_space<vmem>>, %arg3: memref<1x32xf32, #tpu.memory_space<vmem>>, %arg4: memref<1x1xf32, #tpu.memory_space<smem>>, %arg5: memref<8x1xf32, #tpu.memory_space<vmem>>, %arg6: memref<8x1xf32, #tpu.memory_space<vmem>>) attributes {dimension_semantics = [#tpu.dimension_semantics<parallel>, #tpu.dimension_semantics<arbitrary>], iteration_bounds = array<i64: 1, 1>, scalar_prefetch = 0 : i64, scratch_operands = 1 : i64, tpu.core_type = #tpu.core_type<tc>, window_params = [{transform_indices = @transform_0, window_bounds = array<i64: 8, 32>}, {transform_indices = @transform_1, window_bounds = array<i64: 1, 32>}, {transform_indices = @transform_2, window_bounds = array<i64: 1, 1>}, {transform_indices = @transform_3, window_bounds = array<i64: 8, 1>}]} {
    %c0_i32 = arith.constant 0 : i32
    %0 = arith.cmpi eq, %arg1, %c0_i32 : i32
    %1 = arith.extui %0 : i1 to i32
    %c0_i32_0 = arith.constant 0 : i32
    %2 = arith.cmpi ne, %1, %c0_i32_0 : i32
    scf.if %2 {
      %cst_10 = arith.constant 0.000000e+00 : f32
      %15 = vector.broadcast %cst_10 : f32 to vector<8x1xf32>
      %c0_11 = arith.constant 0 : index
      %c0_12 = arith.constant 0 : index
      %16 = vector.load %arg6[%c0_11, %c0_12] : memref<8x1xf32, #tpu.memory_space<vmem>>, vector<8x1xf32>
      tpu.vector_store %arg6[%c0_11, %c0_12], %15 {strides = array<i32>} : memref<8x1xf32, #tpu.memory_space<vmem>>, vector<8x1xf32>,
    } else {
    }
    %c0 = arith.constant 0 : index
    %c0_1 = arith.constant 0 : index
    %3 = vector.load %arg2[%c0, %c0_1] : memref<8x32xf32, #tpu.memory_space<vmem>>, vector<8x32xf32>
    %c0_2 = arith.constant 0 : index
    %c0_3 = arith.constant 0 : index
    %4 = vector.load %arg3[%c0_2, %c0_3] : memref<1x32xf32, #tpu.memory_space<vmem>>, vector<1x32xf32>
    %c0_4 = arith.constant 0 : index
    %c0_5 = arith.constant 0 : index
    %5 = vector.load %arg6[%c0_4, %c0_5] : memref<8x1xf32, #tpu.memory_space<vmem>>, vector<8x1xf32>
    %6 = vector.broadcast %4 : vector<1x32xf32> to vector<8x32xf32>
    %7 = arith.mulf %3, %6 : vector<8x32xf32>
    %cst = arith.constant dense<0.000000e+00> : vector<8xf32>
    %8 = vector.multi_reduction <add>, %7, %cst [1] : vector<8x32xf32> to vector<8xf32>
    %9 = vector.shape_cast %8 : vector<8xf32> to vector<8x1xf32>
    %10 = arith.addf %5, %9 : vector<8x1xf32>
    %c0_6 = arith.constant 0 : index
    %c0_7 = arith.constant 0 : index
    %11 = vector.load %arg6[%c0_6, %c0_7] : memref<8x1xf32, #tpu.memory_space<vmem>>, vector<8x1xf32>
    tpu.vector_store %arg6[%c0_6, %c0_7], %10 {strides = array<i32>} : memref<8x1xf32, #tpu.memory_space<vmem>>, vector<8x1xf32>,
    %c0_i32_8 = arith.constant 0 : i32
    %12 = arith.cmpi eq, %arg1, %c0_i32_8 : i32
    %13 = arith.extui %12 : i1 to i32
    %c0_i32_9 = arith.constant 0 : i32
    %14 = arith.cmpi ne, %13, %c0_i32_9 : i32
    scf.if %14 {
      %c0_10 = arith.constant 0 : index
      %c0_11 = arith.constant 0 : index
      %15 = vector.load %arg6[%c0_10, %c0_11] : memref<8x1xf32, #tpu.memory_space<vmem>>, vector<8x1xf32>
      %c0_12 = arith.constant 0 : index
      %c0_13 = arith.constant 0 : index
      %16 = memref.load %arg4[%c0_12, %c0_13] : memref<1x1xf32, #tpu.memory_space<smem>>
      %17 = vector.broadcast %16 : f32 to vector<8x1xf32>
      %18 = arith.addf %15, %17 : vector<8x1xf32>
      %c0_14 = arith.constant 0 : index
      %c0_15 = arith.constant 0 : index
      %19 = vector.load %arg5[%c0_14, %c0_15] : memref<8x1xf32, #tpu.memory_space<vmem>>, vector<8x1xf32>
      tpu.vector_store %arg5[%c0_14, %c0_15], %18 {strides = array<i32>} : memref<8x1xf32, #tpu.memory_space<vmem>>, vector<8x1xf32>,
    } else {
    }
    return
  }
  func.func @transform_0(%arg0: i32, %arg1: i32) -> (i32, i32) {
    %c0_i32 = arith.constant 0 : i32
    return %arg0, %arg1 : i32, i32
  }
  func.func @transform_1(%arg0: i32, %arg1: i32) -> (i32, i32) {
    %c0_i32 = arith.constant 0 : i32
    %c0_i32_0 = arith.constant 0 : i32
    return %c0_i32, %arg1 : i32, i32
  }
  func.func @transform_2(%arg0: i32, %arg1: i32) -> (i32, i32) {
    %c0_i32 = arith.constant 0 : i32
    %c0_i32_0 = arith.constant 0 : i32
    %c0_i32_1 = arith.constant 0 : i32
    return %c0_i32, %c0_i32_0 : i32, i32
  }
  func.func @transform_3(%arg0: i32, %arg1: i32) -> (i32, i32) {
    %c0_i32 = arith.constant 0 : i32
    %c0_i32_0 = arith.constant 0 : i32
    return %arg0, %c0_i32 : i32, i32
  }
}

</mosaic_0001>

<bundles_post_ra>
// kernel: linear_regression_forward.1
= control target key start
LH: loop header
LB: loop body
LE: loop exit
PB: predicated region body
PF: predicated region fallthrough
CT: control target
= control target key end

     0   :  { %9 = vsyncpa [#allocation5], 0  ;;  %s90_s12 = smov [#allocation4]   ;;  %s136_s0 = inlined_call_operand.hbm [shape: f32[8,32], index: 0, kind: input, shape index: {}]   ;;  %s137_s1 = inlined_call_operand.vmem [shape: f32[1,32], index: 1, kind: input, shape index: {}]   ;;  %s138_s2 = inlined_call_operand.<no memory space> [shape: f32[1,1], index: 2, kind: input, shape index: {}]   ;;  %s139_s3 = inlined_call_operand.vmem [shape: f32[8,1], index: 3, kind: output, shape index: {}]  }
   0x1   :  { %s16_s13 = sshll.u32 %s90_s12, 4  ;;  %s66_s16 = scalar_lea.hbm %s136_s0, 128  ;;  %s17_s13 = int_to_ptr.vmem [resolvable:$true] %s16_s13 }
   0x2   :  { %p67_p0 = scmp.ne.s32.totalorder %s136_s0, %s66_s16  ;;  %p70_p1 = scmp.lt.u32.totalorder %s66_s16, %s136_s0 }
   0x4   :  { %p72_p2 = pnand %p70_p1, %p67_p0 }
   0x6   :  { %75 = shalt.err (!%p72_p2)
}
   0x7   :  { %s76_s21 = scalar_lea.vmem %s17_s13, 128  ;;  %p81_p4 = scmp.lt.s32.totalorder %s17_s13, %s17_s13 }
   0x8   :  { %p77_p3 = scmp.ne.s32.totalorder %s17_s13, %s76_s21  ;;  %p82_p5 = scmp.lt.s32.totalorder %s76_s21, %s76_s21 }
   0xa   :  { %p83_p6 = por %p82_p5, %p81_p4 }
   0xc   :  { %p84_p7 = pnand %p83_p6, %p77_p3 }
   0xe   :  { %87 = shalt.err (!%p84_p7)
}
   0xf   :  { %19 = dma.hbm_to_vmem [thread:$0]  %s136_s0, 128, %s17_s13, [#allocation5]  }
  0x10   :  { %88 = dma.done.wait [#allocation5], 128  }
  0x11   :  { %89 = vsyncadd [#allocation5], 4294967168  ;;  %vm31_vm0 = vcmask 7168   ;;  %v91_v0 = vmov 0.0   ;;  %v33_v1 = vld [vmem:[#allocation4] sm:$0xff]  ;;  %vm43_vm1 = vcmask 261120   ;;  %v55_v8 = vstv %s138_s2 }
  0x12   :  { %32 = vst.msk [vmem:[#allocation2] sm:$0xff] %vm31_vm0, %v91_v0  ;;  %v63_v2 = vld [vmem:[%s137_s1] ss:$0 sm:$0xff] }
  0x13   :  { %v42_v3 = vmul.f32 %v63_v2, %v33_v1 }
  0x15   :  { %v44_v4 = vsel %vm43_vm1, %v42_v3, 0.0 }
  0x16   :  { %45 = vadd.xlane.f32.xlu0 %v44_v4 }
  0x19   :  { %v35_v5 = vld [vmem:[#allocation2] sm:$0xff] }
  0xa3   :  { %v46_v6 = vpop.xlane.xlu0 %45 }
  0xa4   :  { %v47_v7 = vadd.f32 %v46_v6, %v35_v5 }
  0xa6   :  { %49 = vst.msk [vmem:[#allocation2] sm:$0xff] %vm31_vm0, %v47_v7 }
  0xad   :  { %v53_v9 = vld [vmem:[#allocation2] sm:$0xff] }
  0xae   :  { %v56_v10 = vadd.f32 %v55_v8, %v53_v9 }
  0xb0   :  { %57 = vst.msk [vmem:[%s139_s3] sm:$0xff] %vm31_vm0, %v56_v10 }
  0xb1   :  { %62 = vsyncpa [#allocation5], 1 }

</bundles_post_ra>
